<compile_context>
chip_gen: v6e
topology: v6e:2x2x1
jax: 0.10.0
libtpu: 0.0.40
codegen_flags: <defaults>
</compile_context>

<pallas_src>
import jax
import jax.numpy as jnp
from jax.experimental import pallas as pl
from jax.experimental.pallas import tpu as pltpu


def _copy_kernel(x_ref, o_ref):
    # Pure dense 2-D copy: (tile_b, F) -> (tile_b, F).  Unmasked vld/vst.
    o_ref[...] = x_ref[...]


def _sublane_multiple(dtype) -> int:
    """Rows per packed sublane group for this dtype (f32:8, bf16:16, int8:32)."""
    itemsize = jnp.dtype(dtype).itemsize
    return max(8, 32 // max(itemsize, 1))


def _round_up(x: int, m: int) -> int:
    return ((x + m - 1) // m) * m


def _pick_tile_b(B: int, F: int, dtype, vmem_budget_bytes: int = 8 << 20) -> int:
    """Pick a batch tile so (in + out) x 2 double-buffers stay under budget.

    Budget of ~8 MiB total keeps us safely inside the default scoped VMEM
    limit on every generation (v5e: 16 MiB, v6e/v7x: 32 MiB scoped), so no
    vmem_limit_bytes override is required.
    """
    sub = _sublane_multiple(dtype)
    itemsize = jnp.dtype(dtype).itemsize
    bytes_per_row = max(F, 1) * itemsize
    # 2 arrays (in + out) x 2 buffers each = 4 * tile_b * bytes_per_row
    cap_rows = max(vmem_budget_bytes // (4 * bytes_per_row), sub)
    cap_rows = (cap_rows // sub) * sub
    # Don't exceed what a single (sublane-rounded) block over B would need.
    tile_b = min(cap_rows, _round_up(B, sub))
    return max(tile_b, sub)


def unsqueeze_dim1(x: jax.Array, *, use_kernel: bool = True,
                   tile_b: int | None = None) -> jax.Array:
    """Pallas equivalent of torch.unsqueeze(x, dim=1) for a 2-D input.

    With use_kernel=False this is the recommended metadata-only path
    (jnp.expand_dims); with use_kernel=True a dense tiled copy kernel runs
    and the unit dim is added with a free reshape on the result.
    """
    assert x.ndim == 2, "this wrapper implements the dim=1 case for 2-D inputs"
    B, F = x.shape

    if not use_kernel:
        # Preferred in production: zero-cost, metadata-only.
        return jnp.expand_dims(x, axis=1)

    if tile_b is None:
        tile_b = _pick_tile_b(B, F, x.dtype)

    grid = (pl.cdiv(B, tile_b),)

    y2d = pl.pallas_call(
        _copy_kernel,
        out_shape=jax.ShapeDtypeStruct((B, F), x.dtype),
        grid_spec=pltpu.PrefetchScalarGridSpec(
            num_scalar_prefetch=0,
            grid=grid,
            in_specs=[pl.BlockSpec((tile_b, F), lambda i: (i, 0))],
            out_specs=pl.BlockSpec((tile_b, F), lambda i: (i, 0)),
        ),
        compiler_params=pltpu.CompilerParams(
            # no-op on v5e/v6e (1 TC); shards the batch grid across both
            # TensorCores on v7x for this mem-bound copy.
            dimension_semantics=("parallel",),
        ),
    )(x)

    # Unit-dim insertion is metadata-only; done outside the kernel so the
    # kernel's output block stays lane/sublane-dense.
    return y2d.reshape(B, 1, F)


if __name__ == "__main__":
    key = jax.random.PRNGKey(0)

    # Small shapes consistent with the module (it just unsqueezes a 2-D batch).
    # Case 1: aligned batch / features.
    x1 = jax.random.normal(key, (8, 128), dtype=jnp.float32)
    y1 = unsqueeze_dim1(x1)
    jax.block_until_ready(y1)
    ref1 = jnp.expand_dims(x1, axis=1)
    assert y1.shape == (8, 1, 128), y1.shape
    assert y1.dtype == x1.dtype
    assert jnp.array_equal(y1, ref1)

    # Case 2: non-aligned batch and features (exercises cdiv / partial block).
    x2 = jax.random.normal(jax.random.PRNGKey(1), (12, 96), dtype=jnp.float32)
    y2 = unsqueeze_dim1(x2)
    jax.block_until_ready(y2)
    ref2 = jnp.expand_dims(x2, axis=1)
    assert y2.shape == (12, 1, 96), y2.shape
    assert jnp.array_equal(y2, ref2)

    # Case 3: recommended metadata-only path matches too.
    y3 = unsqueeze_dim1(x1, use_kernel=False)
    jax.block_until_ready(y3)
    assert jnp.array_equal(y3, ref1)

    print("KERNEL_OK")
</pallas_src>

<mosaic_0001>
module attributes {stable_mosaic.version = 11 : i64} {
  func.func @_copy_kernel(%arg0: i32, %arg1: memref<8x128xf32, #tpu.memory_space<vmem>>, %arg2: memref<8x128xf32, #tpu.memory_space<vmem>>) attributes {dimension_semantics = [#tpu.dimension_semantics<parallel>], iteration_bounds = array<i64: 1>, scalar_prefetch = 0 : i64, scratch_operands = 0 : i64, tpu.core_type = #tpu.core_type<tc>, window_params = [{transform_indices = @transform_0, window_bounds = array<i64: 8, 128>}, {transform_indices = @transform_1, window_bounds = array<i64: 8, 128>}]} {
    %c0 = arith.constant 0 : index
    %c0_0 = arith.constant 0 : index
    %0 = vector.load %arg1[%c0, %c0_0] : memref<8x128xf32, #tpu.memory_space<vmem>>, vector<8x128xf32>
    %c0_1 = arith.constant 0 : index
    %c0_2 = arith.constant 0 : index
    %1 = vector.load %arg2[%c0_1, %c0_2] : memref<8x128xf32, #tpu.memory_space<vmem>>, vector<8x128xf32>
    tpu.vector_store %arg2[%c0_1, %c0_2], %0 {strides = array<i32>} : memref<8x128xf32, #tpu.memory_space<vmem>>, vector<8x128xf32>,
    return
  }
  func.func @transform_0(%arg0: i32) -> (i32, i32) {
    %c0_i32 = arith.constant 0 : i32
    %c0_i32_0 = arith.constant 0 : i32
    return %arg0, %c0_i32 : i32, i32
  }
  func.func @transform_1(%arg0: i32) -> (i32, i32) {
    %c0_i32 = arith.constant 0 : i32
    %c0_i32_0 = arith.constant 0 : i32
    return %arg0, %c0_i32 : i32, i32
  }
}

</mosaic_0001>

<bundles_post_ra>
// kernel: tpu_custom_call.1
= control target key start
LH: loop header
LB: loop body
LE: loop exit
PB: predicated region body
PF: predicated region fallthrough
CT: control target
= control target key end

     0   :  { %6 = vsyncpa [#allocation3], 0  ;;  %s102_s0 = inlined_call_operand.hbm [shape: f32[8,128], index: 0, kind: input, shape index: {}]   ;;  %s103_s1 = inlined_call_operand.hbm [shape: f32[8,128], index: 1, kind: output, shape index: {}]  }
   0x1   :  { %7 = vsyncpa [#allocation4], 0  ;;  %s84_s6 = smov [#allocation2]  }
   0x2   :  { %s14_s7 = sshll.u32 %s84_s6, 4  ;;  %s15_s7 = int_to_ptr.vmem [resolvable:$true] %s14_s7 }
   0x3   :  { %s48_s8 = scalar_lea.vmem %s15_s7, 128  ;;  %p53_p1 = scmp.lt.s32.totalorder %s15_s7, %s15_s7 }
   0x4   :  { %p49_p0 = scmp.ne.s32.totalorder %s15_s7, %s48_s8  ;;  %p54_p2 = scmp.lt.s32.totalorder %s48_s8, %s48_s8 }
   0x6   :  { %p55_p3 = por %p54_p2, %p53_p1 }
   0x8   :  { %p56_p4 = pnand %p55_p3, %p49_p0 }
   0xa   :  { %59 = shalt.err (!%p56_p4)
}
   0xb   :  { %17 = dma.hbm_to_vmem [thread:$0]  %s102_s0, 128, %s15_s7, [#allocation3]  }
   0xc   :  { %80 = dma.done.wait [#allocation3], 128  }
   0xd   :  { %81 = vsyncadd [#allocation3], 4294967168  ;;  %s85_s11 = smov [#allocation5]   ;;  %v21_v0 = vld [vmem:[#allocation2] sm:$0xff] }
   0xe   :  { %s29_s12 = sshll.u32 %s85_s11, 4  ;;  %22 = vst [vmem:[#allocation5] sm:$0xff] %v21_v0  ;;  %s30_s12 = int_to_ptr.vmem [resolvable:$true] %s29_s12 }
   0xf   :  { %s60_s13 = scalar_lea.vmem %s30_s12, 128  ;;  %p65_p6 = scmp.lt.s32.totalorder %s30_s12, %s30_s12 }
  0x10   :  { %p61_p5 = scmp.ne.s32.totalorder %s30_s12, %s60_s13  ;;  %p66_p7 = scmp.lt.s32.totalorder %s60_s13, %s60_s13 }
  0x12   :  { %p67_p8 = por %p66_p7, %p65_p6 }
  0x14   :  { %p68_p9 = pnand %p67_p8, %p61_p5 }
  0x16   :  { %71 = shalt.err (!%p68_p9)
}
  0x17   :  { %32 = dma.vmem_to_hbm [thread:$0]  %s30_s12, 128, %s103_s1, [#allocation4]  }
  0x18   :  { %82 = dma.done.wait [#allocation4], 128  }
  0x19   :  { %83 = vsyncadd [#allocation4], 4294967168 }
  0x1a   :  { %36 = vsyncpa [#allocation3], 1 }
  0x1b   :  { %37 = vsyncpa [#allocation4], 1 }

</bundles_post_ra>
